<compile_context>
chip_gen: v7x
topology: tpu7x:2x2x1
jax: 0.10.0
libtpu: 0.0.40
codegen_flags: <defaults>
</compile_context>

<pallas_src>
import functools

import jax
import jax.numpy as jnp
import numpy as np
from jax.experimental import pallas as pl
from jax.experimental.pallas import tpu as pltpu


def _round_up(x, m):
    return ((x + m - 1) // m) * m


def _vmem_capacity_bytes():
    """Physical VMEM of the local TPU generation (conservative fallback)."""
    try:
        info = pltpu.get_tpu_info()
        for name in ("vmem_capacity_bytes", "vmem_size_bytes", "vmem_bytes"):
            v = getattr(info, name, None)
            if v:
                return int(v)
    except Exception:
        pass
    return 64 << 20  # assume v7x-like (smallest) if unknown


def _choose_tile_s(seq_len, bytes_per_row_padded, per_buf_target):
    """Sequence tile: lane-aligned (multiple of 128) or the whole sequence,
    preferring a tile that divides S so the tail guard can be compiled out."""
    rows = max(8, per_buf_target // max(1, bytes_per_row_padded))
    if rows >= seq_len:
        return seq_len
    tile = max(128, (rows // 128) * 128)
    tile = min(tile, seq_len)
    if tile >= seq_len:
        return seq_len
    # Prefer a divisor of S (multiple of 128), but don't shrink below tile/2.
    cand = tile
    floor = max(128, tile // 2)
    while cand >= floor:
        if seq_len % cand == 0:
            return cand
        cand -= 128
    return tile


def _act_block_spec(block_shape, index_map, n_buf):
    if n_buf > 2 and hasattr(pl, "Buffered"):
        try:
            return pl.BlockSpec(block_shape, index_map,
                                pipeline_mode=pl.Buffered(n_buf))
        except Exception:  # BlockSpec without pipeline_mode support
            pass
    return pl.BlockSpec(block_shape, index_map)


def _active_loss_kernel(act_ref, mask_ref, w_ref, num_ref, *,
                        target_times_l, reserve_initials, seq_len,
                        tile_s, needs_tail_guard):
    """Grid = (B, num_S_tiles).  Accumulates the per-batch masked L1 numerator
    (scaled by L; the 1/L and the final divide happen in JAX) into a resident
    (1, 8, 128) f32 output block."""
    t = pl.program_id(1)

    @pl.when(t == 0)
    def _init():
        num_ref[...] = jnp.zeros_like(num_ref)

    start = t * tile_s

    # ---- L-reduce on the MXU, native dtype straight into the dot ----------
    act = act_ref[0]                                   # (tile_s, L)
    sums = jnp.dot(act, w_ref[...],                    # (tile_s, 128), all
                   preferred_element_type=jnp.float32,  # lanes identical
                   precision=jax.lax.Precision.HIGHEST)

    # |sum_L - L*target|  (the 1/L scaling is applied once in the epilogue)
    v = jnp.abs(sums - jnp.float32(target_times_l))    # (tile_s, 128)
    if needs_tail_guard:
        # Only traced when S % tile_s != 0: zero rows past the real sequence
        # so OOB garbage (possibly NaN/Inf) never reaches the masked dot.
        row = start + jax.lax.broadcasted_iota(jnp.int32, (tile_s, 128), 0)
        v = jnp.where(row < seq_len, v, 0.0)

    # ---- lane-dense mask: zero the reserved prefix and any OOB tail -------
    col = start + jax.lax.broadcasted_iota(jnp.int32, (1, tile_s), 1)
    valid = (col >= reserve_initials) & (col < seq_len)
    msk = jnp.where(valid, mask_ref[0].astype(jnp.float32), 0.0)  # (1, tile_s)
    msk8 = jnp.broadcast_to(msk, (8, tile_s))

    # ---- mask-weighted position sum, also on the (otherwise idle) MXU -----
    part = jnp.dot(msk8, v,                             # (8, 128), all equal
                   preferred_element_type=jnp.float32,
                   precision=jax.lax.Precision.HIGHEST)
    num_ref[...] += part[None]


def active_loss(activation, mask, *, target, reserve_initials):
    """Pallas implementation of ActiveLoss.forward.

    activation: (B, S, L) float (f32 or bf16);  mask: (B, S) float.
    Returns a scalar float32 loss (0/0 -> NaN when the masked region is
    empty, matching PyTorch; no epsilon guard on purpose).
    """
    assert activation.ndim == 3
    B, S, L = activation.shape
    assert mask.shape == (B, S)

    act_dtype = activation.dtype
    itemsize = jnp.dtype(act_dtype).itemsize
    L_pad = _round_up(L, 128)

    # ---- generation-aware VMEM budgeting (padded footprint!) --------------
    cap = _vmem_capacity_bytes()
    budget = (44 << 20) if cap <= (64 << 20) else (96 << 20)
    per_buf_target = min(budget // 4, 16 << 20)

    tile_s = _choose_tile_s(S, L_pad * itemsize, per_buf_target)
    num_tiles = -(-S // tile_s)
    needs_tail_guard = (S % tile_s) != 0
    n_buf = 3 if num_tiles >= 3 else 2

    act_block_bytes = tile_s * L_pad * itemsize
    footprint = (n_buf * act_block_bytes
                 + 2 * _round_up(L, 8) * 128 * itemsize          # ones weight
                 + 2 * 8 * _round_up(tile_s, 128) * 4            # mask blocks
                 + 2 * 8 * 128 * 4                               # accumulator
                 + (2 << 20))                                    # slack
    vmem_limit = int(min(max(footprint, 16 << 20), budget))

    # Layout-only views / tiny constants (no HBM copy of the activation).
    mask3 = mask.reshape(B, 1, S)                  # S stays on the lane axis
    w_sum = jnp.ones((L, 128), dtype=act_dtype)   # resident MXU reduce weight

    kernel = functools.partial(
        _active_loss_kernel,
        target_times_l=float(target) * float(L),
        reserve_initials=int(reserve_initials),
        seq_len=int(S),
        tile_s=int(tile_s),
        needs_tail_guard=bool(needs_tail_guard),
    )

    cost = pl.CostEstimate(
        flops=int(2 * B * S * (L + 128)),
        transcendentals=0,
        bytes_accessed=int(B * S * L * itemsize + B * S * 4 + B * 8 * 128 * 4),
    )

    def _invoke(buf_count):
        grid_spec = pltpu.PrefetchScalarGridSpec(
            num_scalar_prefetch=0,
            grid=(B, num_tiles),
            in_specs=[
                _act_block_spec((1, tile_s, L), lambda b, t: (b, t, 0),
                                buf_count),
                pl.BlockSpec((1, 1, tile_s), lambda b, t: (b, 0, t)),
                pl.BlockSpec((L, 128), lambda b, t: (0, 0)),
            ],
            out_specs=pl.BlockSpec((1, 8, 128), lambda b, t: (b, 0, 0)),
        )
        fn = pl.pallas_call(
            kernel,
            out_shape=jax.ShapeDtypeStruct((B, 8, 128), jnp.float32),
            grid_spec=grid_spec,
            compiler_params=pltpu.CompilerParams(
                dimension_semantics=("parallel", "arbitrary"),
                vmem_limit_bytes=vmem_limit,
            ),
            cost_estimate=cost,
        )
        return fn(activation, mask3, w_sum)

    if n_buf > 2:
        try:
            out_num = jax.block_until_ready(_invoke(n_buf))
        except Exception:
            out_num = _invoke(2)   # fall back to default double-buffering
    else:
        out_num = _invoke(2)

    # Tiny epilogue in plain JAX: every lane of out_num[b] holds the same
    # per-batch (L-scaled) numerator; denominator read directly from the mask.
    numerator = jnp.sum(out_num[:, 0, 0]) * jnp.float32(1.0 / L)
    denominator = jnp.sum(mask[:, reserve_initials:].astype(jnp.float32))
    return numerator / denominator


def active_loss_ref(activation, mask, *, target, reserve_initials):
    """Pure-JAX reference mirroring the PyTorch forward."""
    act = activation[:, reserve_initials:, :].astype(jnp.float32)
    msk = mask[:, reserve_initials:].astype(jnp.float32)
    mean_act = jnp.mean(act, axis=-1)
    l1 = jnp.abs(mean_act - target) * msk
    return jnp.sum(l1) / jnp.sum(msk)


if __name__ == "__main__":
    # ActiveLoss has no learned parameters; constructor args chosen here:
    TARGET = 0.5
    RESERVE_INITIALS = 2

    B, S, L = 2, 8, 32  # batch, sequence, route dimension

    key = jax.random.PRNGKey(0)
    k_act, k_mask = jax.random.split(key)
    activation = jax.random.uniform(k_act, (B, S, L), dtype=jnp.float32)
    # binary mask with at least some ones beyond the reserved prefix
    mask = (jax.random.uniform(k_mask, (B, S)) > 0.3).astype(jnp.float32)
    mask = mask.at[:, -1].set(1.0)  # guarantee mask.sum() > 0 after slicing

    loss = active_loss(
        activation, mask, target=TARGET, reserve_initials=RESERVE_INITIALS
    )
    loss = jax.block_until_ready(loss)

    ref = active_loss_ref(
        activation, mask, target=TARGET, reserve_initials=RESERVE_INITIALS
    )
    np.testing.assert_allclose(np.asarray(loss), np.asarray(ref), rtol=1e-6, atol=1e-6)

    print("KERNEL_OK")
</pallas_src>

<mosaic_0001>
module attributes {stable_mosaic.version = 11 : i64} {
  func.func @_active_loss_kernel(%arg0: i32, %arg1: i32, %arg2: memref<1x8x32xf32, #tpu.memory_space<vmem>>, %arg3: memref<1x1x8xf32, #tpu.memory_space<vmem>>, %arg4: memref<32x128xf32, #tpu.memory_space<vmem>>, %arg5: memref<1x8x128xf32, #tpu.memory_space<vmem>>) attributes {dimension_semantics = [#tpu.dimension_semantics<parallel>, #tpu.dimension_semantics<arbitrary>], iteration_bounds = array<i64: 2, 1>, scalar_prefetch = 0 : i64, scratch_operands = 0 : i64, tpu.core_type = #tpu.core_type<tc>, window_params = [{transform_indices = @transform_0, window_bounds = array<i64: 1, 8, 32>}, {transform_indices = @transform_1, window_bounds = array<i64: 1, 1, 8>}, {pipeline_mode = #tpu.pipeline_mode<synchronous>, transform_indices = @transform_2, window_bounds = array<i64: 32, 128>}, {transform_indices = @transform_3, window_bounds = array<i64: 1, 8, 128>}]} {
    %c0_i32 = arith.constant 0 : i32
    %0 = arith.cmpi eq, %arg1, %c0_i32 : i32
    %1 = arith.extui %0 : i1 to i32
    %c0_i32_0 = arith.constant 0 : i32
    %2 = arith.cmpi ne, %1, %c0_i32_0 : i32
    scf.if %2 {
      %cst_18 = arith.constant 0.000000e+00 : f32
      %30 = vector.broadcast %cst_18 : f32 to vector<1x8x128xf32>
      %c0_19 = arith.constant 0 : index
      %c0_20 = arith.constant 0 : index
      %c0_21 = arith.constant 0 : index
      %31 = vector.load %arg5[%c0_19, %c0_20, %c0_21] : memref<1x8x128xf32, #tpu.memory_space<vmem>>, vector<1x8x128xf32>
      tpu.vector_store %arg5[%c0_19, %c0_20, %c0_21], %30 {strides = array<i32>} : memref<1x8x128xf32, #tpu.memory_space<vmem>>, vector<1x8x128xf32>,
    } else {
    }
    %c8_i32 = arith.constant 8 : i32
    %3 = arith.muli %arg1, %c8_i32 : i32
    %c0 = arith.constant 0 : index
    %c0_1 = arith.constant 0 : index
    %c0_2 = arith.constant 0 : index
    %4 = vector.load %arg2[%c0, %c0_1, %c0_2] : memref<1x8x32xf32, #tpu.memory_space<vmem>>, vector<1x8x32xf32>
    %5 = vector.shape_cast %4 : vector<1x8x32xf32> to vector<8x32xf32>
    %c0_3 = arith.constant 0 : index
    %c0_4 = arith.constant 0 : index
    %6 = vector.load %arg4[%c0_3, %c0_4] : memref<32x128xf32, #tpu.memory_space<vmem>>, vector<32x128xf32>
    %cst = arith.constant dense<0.000000e+00> : vector<8x128xf32>
    %7 = tpu.matmul %5, %6, %cst {dimension_numbers = #tpu.dot_dimension_numbers<[1], [0], [0], [1], [0, 0, 1, 1], [], []>, precision = #tpu.contract_precision<fp32>} : vector<8x32xf32>, vector<32x128xf32>, vector<8x128xf32> -> vector<8x128xf32>
    %cst_5 = arith.constant 1.600000e+01 : f32
    %8 = vector.broadcast %cst_5 : f32 to vector<8x128xf32>
    %9 = arith.subf %7, %8 : vector<8x128xf32>
    %10 = math.absf %9 : vector<8x128xf32>
    %11 = tpu.iota {dimensions = array<i32: 1>} : vector<1x8xi32>
    %12 = vector.broadcast %3 : i32 to vector<1x8xi32>
    %13 = arith.addi %12, %11 : vector<1x8xi32>
    %c2_i32 = arith.constant 2 : i32
    %14 = vector.broadcast %c2_i32 : i32 to vector<1x8xi32>
    %15 = arith.cmpi sge, %13, %14 : vector<1x8xi32>
    %c8_i32_6 = arith.constant 8 : i32
    %16 = vector.broadcast %c8_i32_6 : i32 to vector<1x8xi32>
    %17 = arith.cmpi slt, %13, %16 : vector<1x8xi32>
    %18 = arith.andi %15, %17 : vector<1x8xi1>
    %c0_7 = arith.constant 0 : index
    %c0_8 = arith.constant 0 : index
    %c0_9 = arith.constant 0 : index
    %19 = vector.load %arg3[%c0_7, %c0_8, %c0_9] : memref<1x1x8xf32, #tpu.memory_space<vmem>>, vector<1x1x8xf32>
    %20 = vector.shape_cast %19 : vector<1x1x8xf32> to vector<1x8xf32>
    %cst_10 = arith.constant 0.000000e+00 : f32
    %21 = vector.broadcast %cst_10 : f32 to vector<1x8xf32>
    %22 = arith.select %18, %20, %21 : vector<1x8xi1>, vector<1x8xf32>
    %23 = vector.shape_cast %22 : vector<1x8xf32> to vector<1x8xf32>
    %24 = vector.broadcast %23 : vector<1x8xf32> to vector<8x8xf32>
    %cst_11 = arith.constant dense<0.000000e+00> : vector<8x128xf32>
    %25 = tpu.matmul %24, %10, %cst_11 {dimension_numbers = #tpu.dot_dimension_numbers<[1], [0], [0], [1], [0, 0, 1, 1], [], []>, precision = #tpu.contract_precision<fp32>} : vector<8x8xf32>, vector<8x128xf32>, vector<8x128xf32> -> vector<8x128xf32>
    %c0_12 = arith.constant 0 : index
    %c0_13 = arith.constant 0 : index
    %c0_14 = arith.constant 0 : index
    %26 = vector.load %arg5[%c0_12, %c0_13, %c0_14] : memref<1x8x128xf32, #tpu.memory_space<vmem>>, vector<1x8x128xf32>
    %27 = vector.shape_cast %25 : vector<8x128xf32> to vector<1x8x128xf32>
    %28 = arith.addf %26, %27 : vector<1x8x128xf32>
    %c0_15 = arith.constant 0 : index
    %c0_16 = arith.constant 0 : index
    %c0_17 = arith.constant 0 : index
    %29 = vector.load %arg5[%c0_15, %c0_16, %c0_17] : memref<1x8x128xf32, #tpu.memory_space<vmem>>, vector<1x8x128xf32>
    tpu.vector_store %arg5[%c0_15, %c0_16, %c0_17], %28 {strides = array<i32>} : memref<1x8x128xf32, #tpu.memory_space<vmem>>, vector<1x8x128xf32>,
    return
  }
  func.func @transform_0(%arg0: i32, %arg1: i32) -> (i32, i32, i32) {
    %c0_i32 = arith.constant 0 : i32
    %c0_i32_0 = arith.constant 0 : i32
    return %arg0, %arg1, %c0_i32 : i32, i32, i32
  }
  func.func @transform_1(%arg0: i32, %arg1: i32) -> (i32, i32, i32) {
    %c0_i32 = arith.constant 0 : i32
    %c0_i32_0 = arith.constant 0 : i32
    return %arg0, %c0_i32, %arg1 : i32, i32, i32
  }
  func.func @transform_2(%arg0: i32, %arg1: i32) -> (i32, i32) {
    %c0_i32 = arith.constant 0 : i32
    %c0_i32_0 = arith.constant 0 : i32
    %c0_i32_1 = arith.constant 0 : i32
    return %c0_i32, %c0_i32_0 : i32, i32
  }
  func.func @transform_3(%arg0: i32, %arg1: i32) -> (i32, i32, i32) {
    %c0_i32 = arith.constant 0 : i32
    %c0_i32_0 = arith.constant 0 : i32
    %c0_i32_1 = arith.constant 0 : i32
    return %arg0, %c0_i32, %c0_i32_0 : i32, i32, i32
  }
}

</mosaic_0001>

<bundles_post_ra>
// kernel: tpu_custom_call.1
= control target key start
LH: loop header
LB: loop body
LE: loop exit
PB: predicated region body
PF: predicated region fallthrough
CT: control target
= control target key end

     0   :  { %8 = vsyncpa [#allocation3], 0  ;;  %s2031_s0 = inlined_call_operand.hbm [shape: f32[2,8,32], index: 0, kind: input, shape index: {}]   ;;  %s2032_s1 = inlined_call_operand.vmem [shape: f32[2,1,8], index: 1, kind: input, shape index: {}]   ;;  %s2033_s2 = inlined_call_operand.hbm [shape: f32[32,128], index: 2, kind: input, shape index: {}]   ;;  %s2034_s3 = inlined_call_operand.hbm [shape: f32[2,8,128], index: 3, kind: output, shape index: {}]  }
   0x1   :  { %10 = vsyncpa [#allocation3 + $0x1], 0 }
   0x2   :  { %11 = vsyncpa [#allocation6], 0 }
   0x3   :  { %12 = vsyncpa [#allocation4], 0 }
   0x4   :  { %14 = vsyncpa [#allocation4 + $0x1], 0  ;;  %s1766_s12 = smov 0   ;;  %s1768_s13 = smov 0  }
   0x5   :  { %s1770_s14 = smov 0   ;;  %s1772_s15 = smov 0  }
   0x6   :  { %s1774_s16 = smov 0   ;;  %s1776_s17 = smov 0  }
   0x7 LB: > { %s1324_s18 = sadd.s32 4294967295, %s1736_s17   ;;  %s1325_s19 = sadd.s32 4294967294, %s1736_s17   ;;  %s1736_s17 = sphi %s1776_s17, %s20_s17   ;;  %s1732_s16 = sphi %s1774_s16, %s2058_s16   ;;  %s1728_s15 = sphi %s1772_s15, %s2057_s15   ;;  %s1724_s14 = sphi %s1770_s14, %s2056_s14   ;;  %s1720_s13 = sphi %s1768_s13, %s2055_s13   ;;  %s1716_s12 = sphi %s1766_s12, %s2054_s12  }
   0x8   : > { %p54_p0 = scmp.ne.s32.totalorder %s1720_s13, %s1716_s12  ;;  %p1800_p1 = scmp.eq.s32.totalorder %s1324_s18, 0 }
   0x9   : > { %p1804_p2 = scmp.eq.s32.totalorder %s1324_s18, 1  ;;  %p133_p3 = scmp.eq.s32.totalorder %s1325_s19, 1 }
   0xa   : > { %s2039_s20 = scalar_select %p1800_p1, 1, 0 }
   0xb   : > { %s2040_s21 = scalar_select %p1804_p2, 1, 0 }
   0xc   : > { %p1810_p4 = por %p1800_p1, %p54_p0  ;;  %p1326_p5 = scmp.ge.s32.totalorder %s1736_s17, 1 }
   0xd   : > { %p1815_p6 = por %p133_p3, %p54_p0  ;;  %p140_p7 = scmp.lt.s32.totalorder %s1736_s17, 3 }
   0xe   : > { %s2041_s22 = scalar_select %p1810_p4, 1, 0 }
   0xf   : > { %s2042_s23 = scalar_select %p1815_p6, 1, 0 }
  0x10   : > { %p1820_p8 = pnand %p1326_p5, %p140_p7  ;;  %s1738_s25 = smov [#allocation5]  }
  0x11   : > { %s152_s26 = sshll.u32 %s1738_s25, 4  ;;  %s32_s28 = sadd.s32 1, %s1732_s16  ;;  %s153_s26 = int_to_ptr.vmem [resolvable:$true] %s152_s26 }
  0x12   : > { %s2043_s24 = scalar_select %p1820_p8, 1, 0 }
  0x13   : > { %p1522_p9 = pneg %p1820_p8  ;;  %s1592_s4 = scalar_lea.hbm %s2033_s2, 512 }
  0x14   : > { %p1593_p12 = scmp.ne.s32.totalorder %s2033_s2, %s1592_s4  ;;  %p1599_p5 = scmp.lt.u32.totalorder %s1592_s4, %s2033_s2 }
  0x15   : > { %p1829_p11 = pnand %p1522_p9, %p1800_p1 }
  0x17   : > { %p1594_p13 = pneg %p1829_p11 }
  0x19   : > { %p1595_p0 = pnand %p1594_p13, %p1593_p12 }
  0x1b   : > { %p1596_p3 = pneg %p1595_p0 }
  0x1d   : > { %p1601_p7 = pnand %p1599_p5, %p1596_p3 }
  0x1f   : > { %1604 = shalt.err (!%p1601_p7)
}
  0x20   : > { %s1605_s9 = scalar_lea.vmem %s153_s26, 512  ;;  %p1613_p1 = scmp.lt.s32.totalorder %s153_s26, %s153_s26 }
  0x21   : > { %p1606_p9 = scmp.ne.s32.totalorder %s153_s26, %s1605_s9  ;;  %p1614_p4 = scmp.lt.s32.totalorder %s1605_s9, %s1605_s9 }
  0x23   : > { %p1608_p10 = pnand %p1606_p9, %p1594_p13  ;;  %p1615_p8 = por %p1614_p4, %p1613_p1 }
  0x25   : > { %p1609_p6 = pneg %p1608_p10 }
  0x27   : > { %p1616_p2 = pnand %p1615_p8, %p1609_p6 }
  0x29   : > { %1619 = shalt.err (!%p1616_p2)
}
  0x2a   : > { %s1739_s10 = smov 128   ;;  %s1740_s11 = smov 8  }
  0x2b   : > { %1525 = dma.hbm_to_vmem [thread:$0]  (!%p1829_p11), %s2033_s2, 512, %s153_s26, [#allocation6], %s1739_s10, %s1739_s10, %s1740_s11  }
  0x2c   : > { %p34_p1 = scmp.ge.s32.totalorder %s32_s28, 2  ;;  %s41_s25 = sadd.s32 1, %s1724_s14 }
  0x2d   : > { %p48_p2 = scmp.ne.s32.totalorder %s1724_s14, %s1720_s13  ;;  %p49_p4 = scmp.eq.s32.totalorder %s1736_s17, 0 }
  0x2e   : > { %s2060_s28 = smov (%p34_p1, %s32_s28), 0  ;;  %p2046_p8 = scmp.ne.s32.totalorder %s2040_s21, 0 }
  0x2f   : > { %p1856_p6 = por %p49_p4, %p48_p2  ;;  %s36_s27 = ssub.s32 %s1732_s16, %s2060_s28 }
  0x30   : > { %p1862_p10 = por %p2046_p8, %p48_p2  ;;  %p1535_p12 = scmp.lt.s32.totalorder %s1736_s17, 2 }
  0x31   : > { %p39_p11 = scmp.eq.s32.totalorder %s36_s27, 0  ;;  %s166_s26 = sand.u32 1, %s1724_s14  }
  0x32   : > { %s1329_s4 = sshll.u32 %s166_s26, 3  ;;  %s1330_s6 = sshll.u32 %s1732_s16, 7 }
  0x33   : > { %s1871_s5 = scalar_select %p39_p11, %s1724_s14, %s41_s25  }
  0x34   : > { %s1877_s9 = scalar_lea.hbm %s2031_s0, %s1330_s6  ;;  %s170_s21 = scalar_lea.vmem [#allocation2], %s1329_s4 }
  0x35   : > { %s178_s10 = sshll.u32 %s170_s21, 4  ;;  %p1883_p13 = pnand %p1535_p12, %p1856_p6  ;;  %s1879_s10 = int_to_ptr.vmem [resolvable:$true] %s178_s10 }
  0x36   : > { %s167_s18 = scalar_lea.sflag [#allocation3], %s166_s26  ;;  %s1620_s19 = scalar_lea.hbm %s1877_s9, 128 }
  0x37   : > { %p1621_p0 = scmp.ne.s32.totalorder %s1877_s9, %s1620_s19  ;;  %p1622_p3 = pneg %p1883_p13 }
  0x38   : > { %s1625_s4 = scalar_lea.hbm %s2031_s0, 256  ;;  %p1626_p9 = scmp.lt.u32.totalorder %s1877_s9, %s2031_s0 }
  0x39   : > { %p1623_p5 = pnand %p1622_p3, %p1621_p0  ;;  %p1627_p1 = scmp.lt.u32.totalorder %s1625_s4, %s1620_s19 }
  0x3a   : > { %p1629_p4 = scmp.lt.u32.totalorder %s1620_s19, %s1877_s9 }
  0x3b   : > { %p1624_p7 = pneg %p1623_p5  ;;  %p1628_p2 = por %p1627_p1, %p1626_p9 }
  0x3d   : > { %p1630_p6 = por %p1629_p4, %p1628_p2 }
  0x3f   : > { %p1631_p8 = pnand %p1630_p6, %p1624_p7 }
  0x41   : > { %1634 = shalt.err (!%p1631_p8)
}
  0x42   : > { %s1635_s26 = scalar_lea.vmem %s1879_s10, 128  ;;  %s1741_s7 = smov [#allocation2]  }
  0x43   : > { %p1636_p12 = scmp.ne.s32.totalorder %s1879_s10, %s1635_s26  ;;  %s1640_s8 = sshll.u32 %s1741_s7, 4  ;;  %s1641_s8 = int_to_ptr.vmem [resolvable:$false] %s1640_s8 }
  0x44   : > { %s1642_s21 = scalar_lea.vmem %s1641_s8, 256  ;;  %p1643_p5 = scmp.lt.s32.totalorder %s1879_s10, %s1641_s8 }
  0x45   : > { %p1638_p11 = pnand %p1636_p12, %p1622_p3  ;;  %p1644_p9 = scmp.lt.s32.totalorder %s1642_s21, %s1635_s26 }
  0x47   : > { %p1639_p0 = pneg %p1638_p11  ;;  %p1645_p1 = por %p1644_p9, %p1643_p5 }
  0x49   : > { %p1646_p2 = pnand %p1645_p1, %p1639_p0 }
  0x4b   : > { %1649 = shalt.err (!%p1646_p2)
}
  0x4c   : > { %1529 = dma.hbm_to_vmem [thread:$0]  (!%p1883_p13), %s1877_s9, 128, %s1879_s10, %s167_s18  }
  0x4d   : > { %p2049_p7 = scmp.ne.s32.totalorder %s2043_s24, 0 }
  0x4e   : > { %s1915_s19 = sand.u32 (!%p2049_p7), 1, %s1720_s13   ;;  %p2050_p3 = scmp.ne.s32.totalorder (!%p2049_p7), %s2041_s22, 0 }
  0x4f   : > { %196 = sbr.rel (%p2049_p7) target bundleno = 592 (0x250), region = 32  ;;  %s1332_s25 = sshll.u32 (!%p2049_p7), %s1915_s19, 3 }
  0x50   : > { %s199_s27 = scalar_lea.sflag (!%p2049_p7), [#allocation3], %s1915_s19  ;;  %s202_s4 = scalar_lea.vmem (!%p2049_p7), [#allocation2], %s1332_s25 }
  0x56   : > { %1703 = dma.done.wait (%p2050_p3), %s199_s27, 128  }
  0x57   : > { %1705 = vsyncadd (%p2050_p3), %s199_s27, 4294967168  ;;  %p2051_p13 = scmp.ne.s32.totalorder %s2039_s20, 0 }
  0x59   : > { %1707 = dma.done.wait (%p2051_p13), [#allocation6], 512  }
  0x5a   : > { %1709 = vsyncadd (%p2051_p13), [#allocation6], 4294966784  ;;  %v1742_v0 = vmov 0.0|0.0   ;;  %vm1743_vm0 = vmmov 0   ;;  %v1744_v1 = vmov 0.0   ;;  %vm252_vm1 = vcmask 261120  }
  0x5b   : > { %1478 = vmatprep.subr.bf16.mxu0 %v1742_v0  ;;  %1484 = vmatprep.subr.bf16.mxu1 %v1742_v0  ;;  %v248_v2 = vld [vmem:[#allocation5] sm:$0xff]  ;;  %v249_v3 = vld [vmem:[#allocation5 + $0x8] sm:$0xff]  ;;  %v250_v4 = vld [vmem:[#allocation5 + $0x10] sm:$0xff]  ;;  %p235_p4 = scmp.lt.s32.totalorder %s1728_s15, 1  ;;  %v743_v41 = vlaneseq  ;;  %vm756_vm5 = vcmask 64512   ;;  %s1337_s10 = sshll.u32 %s1728_s15, 7 }
  0x5c   : > { %1390 = vmatprep.mubr.msk.f32.mxu0 %vm1743_vm0, %v1744_v1  ;;  %1401 = vmatprep.mubr.msk.f32.mxu1 %vm1743_vm0, %v1744_v1  ;;  %v257_v5 = vand.u32 4294901760, %v248_v2  ;;  %v260_v6 = vand.u32 4294901760, %v249_v3  ;;  %v251_v7 = vld [vmem:[#allocation5 + $0x18] sm:$0xff]  ;;  %v263_v8 = vand.u32 4294901760, %v250_v4  ;;  %s234_s11 = scalar_lea.vmem [#allocation7], %s1332_s25  ;;  %s1982_s26 = scalar_lea.hbm %s2034_s3, %s1337_s10 }
  0x5d   : > { %v247_v9 = vld [vmem:[%s202_s4] sm:$0xff]  ;;  %v266_v10 = vand.u32 4294901760, %v251_v7  ;;  %s236_s20 = scalar_select %p235_p4, %s1728_s15, 1  ;;  %v744_v42 = vand.u32 127, %v743_v41  ;;  %v753_v43 = vshrl.u32 %v743_v41, 7 }
  0x5e   : > { %v254_v11 = vsel %vm252_vm1, %v247_v9, 0  ;;  %v1479_v12 = vpack.c.bf16 %v260_v6, %v257_v5  ;;  %v337_v13 = vsub.f32 %v248_v2, %v257_v5  ;;  %v344_v14 = vsub.f32 %v249_v3, %v260_v6  ;;  %s1223_s18 = sshll.u32 %s234_s11, 4  ;;  %s1210_s7 = scalar_lea.sflag [#allocation4], %s1915_s19  ;;  %s1984_s18 = int_to_ptr.vmem [resolvable:$true] %s1223_s18 }
  0x5f   : > { %v351_v15 = vsub.f32 %v250_v4, %v263_v8  ;;  %v358_v16 = vsub.f32 %v251_v7, %v266_v10  ;;  %v325_v17 = vand.u32 4294901760, %v254_v11  ;;  %v1482_v18 = vpack.c.bf16 %v266_v10, %v263_v8  ;;  %s240_s9 = scalar_lea.vmem %s2032_s1, %s236_s20  ;;  %s1650_s8 = scalar_lea.vmem %s1984_s18, 128 }
  0x60   : > { %1480 = vmatpush3.bf16.msra.mxu0 %v1479_v12  ;;  %v338_v19 = vand.u32 4294901760, %v337_v13  ;;  %v345_v20 = vand.u32 4294901760, %v344_v14  ;;  %v1491_v35 = vpack.c.bf16 %v344_v14, %v337_v13  ;;  %vm747_vm2 = vcmp.ge.s32.totalorder %v744_v42, 2  ;;  %v750_v44 = vld [vmem:[%s240_s9] sm:$0x1]  ;;  %p1651_p6 = scmp.ne.s32.totalorder %s1984_s18, %s1650_s8  ;;  %s1745_s15 = smov [#allocation7]  }
  0x61   : > { %v352_v21 = vand.u32 4294901760, %v351_v15  ;;  %1481 = vmatprep.subr.bf16.mxu0 %v1742_v0  ;;  %v326_v22 = vsub.f32 %v254_v11, %v325_v17  ;;  %v359_v23 = vand.u32 4294901760, %v358_v16  ;;  %v1494_v38 = vpack.c.bf16 %v358_v16, %v351_v15  ;;  %s1654_s21 = sshll.u32 %s1745_s15, 4  ;;  %s1655_s21 = int_to_ptr.vmem [resolvable:$false] %s1654_s21 }
  0x62   : > { %v339_v24 = vsub.f32 %v337_v13, %v338_v19  ;;  %v346_v25 = vsub.f32 %v344_v14, %v345_v20  ;;  %v1503_v39 = vpack.c.bf16 %v345_v20, %v338_v19  ;;  %vm748_vm3 = vcmp.lt.s32.totalorder %v744_v42, 8  ;;  %p1652_p8 = pnand %p1651_p6, %p1862_p10  ;;  %s1656_s25 = scalar_lea.vmem %s1655_s21, 256 }
  0x63   : > { %v353_v26 = vsub.f32 %v351_v15, %v352_v21  ;;  %v327_v27 = vand.u32 4294901760, %v326_v22  ;;  %v360_v28 = vsub.f32 %v358_v16, %v359_v23  ;;  %v1506_v40 = vpack.c.bf16 %v359_v23, %v352_v21  ;;  %vm749_vm4 = vmand %vm747_vm2, %vm748_vm3  ;;  %p1657_p11 = scmp.lt.s32.totalorder %s1984_s18, %s1655_s21  ;;  %p1658_p0 = scmp.lt.s32.totalorder %s1656_s25, %s1650_s8 }
  0x64   : > { %1483 = vmatpush3.bf16.msra.mxu0 %v1482_v18  ;;  %v340_v29 = vand.u32 4294901760, %v339_v24  ;;  %v347_v30 = vand.u32 4294901760, %v346_v25  ;;  %v754_v47 = vsub.s32 0, %v753_v43  ;;  %v751_v48 = vsel %vm749_vm4, %v750_v44, 0.0  ;;  %p1653_p12 = pneg %p1652_p8 }
  0x65   : > { %v354_v31 = vand.u32 4294901760, %v353_v26  ;;  %1490 = vmatprep.subr.bf16.mxu0 %v1742_v0  ;;  %v328_v32 = vsub.f32 %v326_v22, %v327_v27  ;;  %v361_v33 = vand.u32 4294901760, %v360_v28  ;;  %p1659_p5 = por %p1658_p0, %p1657_p11 }
  0x66   : > { %v1485_v34 = vpack.c.bf16 %v347_v30, %v340_v29  ;;  %v755_v49 = vrot.slane %v751_v48, %v754_v47 }
  0x67   : > { %v329_v36 = vand.u32 4294901760, %v328_v32  ;;  %v1488_v37 = vpack.c.bf16 %v361_v33, %v354_v31  ;;  %p1660_p9 = pnand %p1659_p5, %p1653_p12 }
  0x68   : > { %1486 = vmatpush3.bf16.msra.mxu1 %v1485_v34  ;;  %v758_v56 = vsel %vm756_vm5, %v755_v49, 0 }
  0x69   : > { %1391 = vmatmul.mubr.f32.vlgmr.msra.gmra.mrb[0].mxu0 %v329_v36  ;;  %1487 = vmatprep.subr.bf16.mxu1 %v1742_v0  ;;  %v826_v57 = vand.u32 4294901760, %v758_v56 }
  0x6a   : > { %1492 = vmatpush3.bf16.msra.mxu0 %v1491_v35  ;;  %1412 = vmatprep.mubr.msk.f32.mxu0 %vm1743_vm0, %v1744_v1 }
  0x6b   : > { %1493 = vmatprep.subr.bf16.mxu0 %v1742_v0  ;;  %v827_v62 = vsub.f32 %v758_v56, %v826_v57 }
  0x6c   : > { %1489 = vmatpush3.bf16.msra.mxu1 %v1488_v37 }
  0x6d   : > { %1496 = vmatprep.subr.bf16.mxu1 %v1742_v0  ;;  %v828_v2 = vand.u32 4294901760, %v827_v62 }
  0x6e   : > { %1495 = vmatpush3.bf16.msra.mxu0 %v1494_v38 }
  0x6f   : > { %1402 = vmatmul.mubr.f32.vlgmr.msra.gmra.mrb[0].mxu1 %v325_v17  ;;  %1502 = vmatprep.subr.bf16.mxu0 %v1742_v0  ;;  %v829_v6 = vsub.f32 %v827_v62, %v828_v2 }
  0x70   : > { %1498 = vmatpush3.bf16.msra.mxu1 %v1479_v12  ;;  %1423 = vmatprep.mubr.msk.f32.mxu1 %vm1743_vm0, %v1744_v1 }
  0x71   : > { %1413 = vmatmul.mubr.f32.vlgmr.msra.gmra.mrb[2].mxu0 %v326_v22  ;;  %1499 = vmatprep.subr.bf16.mxu1 %v1742_v0  ;;  %v830_v9 = vand.u32 4294901760, %v829_v6 }
  0x72   : > { %1504 = vmatpush3.bf16.msra.mxu0 %v1503_v39  ;;  %1434 = vmatprep.mubr.msk.f32.mxu0 %vm1743_vm0, %v1744_v1 }
  0x73   : > { %1505 = vmatprep.subr.bf16.mxu0 %v1742_v0 }
  0x74   : > { %1501 = vmatpush3.bf16.msra.mxu1 %v1482_v18 }
  0x75   : > { %1508 = vmatprep.subr.bf16.mxu1 %v1742_v0 }
  0x76   : > { %1507 = vmatpush3.bf16.msra.mxu0 %v1506_v40 }
  0x77   : > { %1424 = vmatmul.mubr.f32.vlgmr.msra.gmra.mrb[2].mxu1 %v327_v27  ;;  %1448 = vmatprep.subr.mxu0 %v1744_v1 }
  0x78   : > { %1510 = vmatpush3.bf16.msra.mxu1 %v1479_v12  ;;  %1445 = vmatprep.mubr.msk.f32.mxu1 %vm1743_vm0, %v1744_v1 }
  0x79   : > { %1435 = vmatmul.mubr.f32.vlgmr.msra.gmra.mrb[4].mxu0 %v325_v17  ;;  %1511 = vmatprep.subr.bf16.mxu1 %v1742_v0 }
  0x7a   : > { %1450 = vmatprep.mubr.msk.f32.mxu0 %vm1743_vm0, %v1744_v1 }
  0x7c   : > { %1513 = vmatpush3.bf16.msra.mxu1 %v1482_v18 }
  0x7d   : > { %1453 = vmatprep.subr.mxu1 %v1744_v1 }
  0x7f   : > { %1446 = vmatmul.mubr.f32.vlgmr.msra.gmra.mrb[4].mxu1 %v325_v17 }
  0x80   : > { %1455 = vmatprep.mubr.msk.f32.mxu1 %vm1743_vm0, %v1744_v1 }
 0x13c   : > { %v331_v45 = vpop.f32.mrb[0].mxu0 }
 0x13d   : > { %v1392_v46 = vpop.f32.mrb[1].mxu0 }
 0x142   : > { %v422_v50 = vpop.f32.mrb[0].mxu1 }
 0x143   : > { %v423_v51 = vadd.f32 %v422_v50, %v331_v45  ;;  %v1403_v52 = vpop.f32.mrb[1].mxu1 }
 0x144   : > { %v502_v53 = vpop.f32.mrb[2].mxu0 }
 0x145   : > { %v503_v54 = vadd.f32 %v502_v53, %v423_v51  ;;  %v1414_v55 = vpop.f32.mrb[3].mxu0 }
 0x14a   : > { %v579_v58 = vpop.f32.mrb[2].mxu1 }
 0x14b   : > { %v580_v59 = vadd.f32 %v579_v58, %v503_v54  ;;  %v1425_v60 = vpop.f32.mrb[3].mxu1 }
 0x14c   : > { %v662_v61 = vpop.f32.mrb[4].mxu0 }
 0x14d   : > { %v663_v63 = vadd.f32 %v662_v61, %v580_v59  ;;  %v1436_v0 = vpop.f32.mrb[5].mxu0 }
 0x152   : > { %v737_v3 = vpop.f32.mrb[4].mxu1 }
 0x153   : > { %v738_v4 = vadd.f32 %v737_v3, %v663_v63  ;;  %v1447_v5 = vpop.f32.mrb[5].mxu1 }
 0x155   : > { %v1335_v7 = vadd.f32 -16.0, %v738_v4 }
 0x157   : > { %v742_v8 = vand.u32 2147483647, %v1335_v7 }
 0x159   : > { %v761_v10 = vand.u32 4294901760, %v742_v8 }
 0x15b   : > { %v838_v11 = vsub.f32 %v742_v8, %v761_v10  ;;  %1449 = vmatpush3.msra.mxu0 %v761_v10 }
 0x15c   : > { %1451 = vmatmul.mubr.f32.vlgmr.msra.gmra.mrb[6].mxu0 %v830_v9  ;;  %1458 = vmatprep.subr.mxu0 %v1744_v1 }
 0x15d   : > { %1459 = vmatpush3.msra.mxu0 %v838_v11  ;;  %1460 = vmatprep.mubr.msk.f32.mxu0 %vm1743_vm0, %v1744_v1  ;;  %v839_v12 = vand.u32 4294901760, %v838_v11 }
 0x15e   : > { %1468 = vmatprep.subr.mxu0 %v1744_v1 }
 0x15f   : > { %v840_v13 = vsub.f32 %v838_v11, %v839_v12 }
 0x160   : > { %1461 = vmatmul.mubr.f32.vlgmr.msra.gmra.mrb[8].mxu0 %v827_v62 }
 0x161   : > { %1469 = vmatpush3.msra.mxu0 %v839_v12  ;;  %v841_v14 = vand.u32 4294901760, %v840_v13  ;;  %1470 = vmatprep.mubr.msk.f32.mxu0 %vm1743_vm0, %v1744_v1 }
 0x163   : > { %1454 = vmatpush3.msra.mxu1 %v841_v14 }
 0x164   : > { %1456 = vmatmul.mubr.f32.vlgmr.msra.gmra.mrb[6].mxu1 %v826_v57  ;;  %1463 = vmatprep.subr.mxu1 %v1744_v1 }
 0x165   : > { %1464 = vmatpush3.msra.mxu1 %v761_v10  ;;  %1465 = vmatprep.mubr.msk.f32.mxu1 %vm1743_vm0, %v1744_v1 }
 0x166   : > { %1473 = vmatprep.subr.mxu1 %v1744_v1  ;;  %1471 = vmatmul.mubr.f32.vlgmr.msra.gmra.mrb[10].mxu0 %v826_v57 }
 0x168   : > { %1466 = vmatmul.mubr.f32.vlgmr.msra.gmra.mrb[8].mxu1 %v828_v2 }
 0x169   : > { %1474 = vmatpush3.msra.mxu1 %v761_v10  ;;  %1475 = vmatprep.mubr.msk.f32.mxu1 %vm1743_vm0, %v1744_v1 }
 0x16c   : > { %1476 = vmatmul.mubr.f32.vlgmr.msra.gmra.mrb[10].mxu1 %v826_v57 }
 0x22f   : > { %v832_v15 = vpop.f32.mrb[6].mxu0 }
 0x230   : > { %v1452_v16 = vpop.f32.mrb[7].mxu0 }
 0x233   : > { %v982_v17 = vpop.f32.mrb[8].mxu0 }
 0x234   : > { %v1462_v18 = vpop.f32.mrb[9].mxu0 }
 0x237   : > { %v908_v19 = vpop.f32.mrb[6].mxu1 }
 0x238   : > { %v909_v20 = vadd.f32 %v908_v19, %v832_v15  ;;  %v1457_v21 = vpop.f32.mrb[7].mxu1 }
 0x239   : > { %v1130_v22 = vpop.f32.mrb[10].mxu0 }
 0x23a   : > { %v983_v23 = vadd.f32 %v982_v17, %v909_v20  ;;  %v1472_v24 = vpop.f32.mrb[11].mxu0 }
 0x23b   : > { %v1056_v25 = vpop.f32.mrb[8].mxu1 }
 0x23c   : > { %v1057_v26 = vadd.f32 %v1056_v25, %v983_v23  ;;  %v1467_v27 = vpop.f32.mrb[9].mxu1 }
 0x23e   : > { %v1131_v28 = vadd.f32 %v1130_v22, %v1057_v26 }
 0x23f   : > { %v1202_v1 = vpop.f32.mrb[10].mxu1 }
 0x240   : > { %v1203_v29 = vadd.f32 %v1202_v1, %v1131_v28  ;;  %v1477_v30 = vpop.f32.mrb[11].mxu1 }
 0x242   : > { %1208 = vst [vmem:[%s234_s11] sm:$0xff] %v1203_v29 }
 0x243   : > { %1663 = shalt.err (!%p1660_p9)
}
 0x244   : > { %s1664_s19 = scalar_lea.hbm %s1982_s26, 128  ;;  %s1668_s20 = scalar_lea.hbm %s2034_s3, 256 }
 0x245   : > { %p1665_p1 = scmp.ne.s32.totalorder %s1982_s26, %s1664_s19  ;;  %p1669_p3 = scmp.lt.u32.totalorder %s1982_s26, %s2034_s3 }
 0x246   : > { %p1670_p13 = scmp.lt.u32.totalorder %s1668_s20, %s1664_s19  ;;  %p1672_p6 = scmp.lt.u32.totalorder %s1664_s19, %s1982_s26 }
 0x247   : > { %p1666_p2 = pnand %p1665_p1, %p1862_p10 }
 0x248   : > { %p1671_p4 = por %p1670_p13, %p1669_p3 }
 0x249   : > { %p1667_p7 = pneg %p1666_p2 }
 0x24a   : > { %p1673_p8 = por %p1672_p6, %p1671_p4 }
 0x24c   : > { %p1674_p12 = pnand %p1673_p8, %p1667_p7 }
 0x24e   : > { %1677 = shalt.err (!%p1674_p12)
}
 0x24f   : > { %1520 = dma.vmem_to_hbm [thread:$0]  (%p1862_p10), %s1984_s18, 128, %s1982_s26, %s1210_s7  }
 0x250 PF: > { %s1235_s9 = sand.u32 1, %s1716_s12   ;;  %p2052_p11 = scmp.ne.s32.totalorder %s2042_s23, 0 }
 0x251   : > { %p2053_p0 = scmp.ge.s32.totalorder %s1736_s17, 2  ;;  %s1236_s10 = scalar_lea.sflag [#allocation4], %s1235_s9 }
 0x253   : > { %p1531_p5 = pnand %p2053_p0, %p2052_p11 }
 0x255   : > { %1711 = dma.done.wait (!%p1531_p5), %s1236_s10, 128  }
 0x256   : > { %1713 = vsyncadd (!%p1531_p5), %s1236_s10, 4294967168  ;;  %s20_s17 = sadd.s32 1, %s1736_s17   ;;  %s2054_s12 = smov %s1720_s13 }
 0x257   : > { %p17_p9 = scmp.ge.s32.totalorder %s20_s17, 4   ;;  %s2055_s13 = smov %s1724_s14 }
 0x258   : > { %s2056_s14 = smov %s1871_s5  ;;  %s2057_s15 = smov %s1732_s16 }
 0x259   : > { %s2058_s16 = smov %s2060_s28  ;;  %19 = sbr.rel (!%p17_p9) target bundleno = 7 (0x7), region = 88 }
 0x260   :  { %1241 = vsyncpa [#allocation3], 1 }
 0x261   :  { %1243 = vsyncpa [#allocation3 + $0x1], 1 }
 0x262   :  { %1244 = vsyncpa [#allocation6], 1 }
 0x263   :  { %1245 = vsyncpa [#allocation4], 1 }
 0x264   :  { %1247 = vsyncpa [#allocation4 + $0x1], 1 }

</bundles_post_ra>
